<compile_context>
chip_gen: v7x
topology: tpu7x:2x2x1
jax: 0.10.0
libtpu: 0.0.40
codegen_flags: <defaults>
</compile_context>

<pallas_src>
import jax
import jax.numpy as jnp
from jax.experimental import pallas as pl
from jax.experimental.pallas import tpu as pltpu

IN_FEATURES = 12
OUT_FEATURES = 3


# ----------------------------- kernel bodies ------------------------------ #

def _linear_rowmajor_kernel(x_ref, wt_ref, b_ref, o_ref):
    # x_ref: (TB, IN)   wt_ref: (IN, OUT)   b_ref: (1, OUT)   o_ref: (TB, OUT)
    # W^T is pre-materialized host-side, so the contraction runs directly
    # (no in-kernel transpose / relayout).
    y = jnp.dot(x_ref[...], wt_ref[...], preferred_element_type=jnp.float32)
    o_ref[...] = (y + b_ref[...]).astype(o_ref.dtype)


def _linear_lanedense_kernel(xt_ref, w_ref, b_ref, ot_ref):
    # Batch-in-lanes layout:
    # xt_ref: (IN, TB)   w_ref: (OUT, IN)   b_ref: (OUT, 1)   ot_ref: (OUT, TB)
    # Output last dim is TB (multiple of 128 in the tiled path) -> lane-dense
    # full-width stores instead of 3/128-lane masked stores.
    y = jnp.dot(w_ref[...], xt_ref[...], preferred_element_type=jnp.float32)
    ot_ref[...] = (y + b_ref[...]).astype(ot_ref.dtype)


def _cost(B, IN, OUT):
    return pl.CostEstimate(
        flops=2 * B * IN * OUT,
        transcendentals=0,
        bytes_accessed=4 * (B * IN + IN * OUT + OUT + B * OUT),
    )


# ------------------------------- wrappers ---------------------------------- #

def net_forward(x, w, b, *, batch_tile=8192):
    """Row-major path.  x: [B, 12] f32, w: [3, 12] f32 (PyTorch layout),
    b: [3] f32  ->  y: [B, 3] f32."""
    B, IN = x.shape
    OUT, IN_w = w.shape
    assert IN == IN_w, "weight in_features mismatch"

    w_t = jnp.transpose(w)       # (IN, OUT): transpose once, outside the kernel
    b2d = b.reshape(1, OUT)      # keep kernel operands 2-D for TPU layout
    cost = _cost(B, IN, OUT)

    if B <= batch_tile:
        # Tiny-B path: whole operands in VMEM, single kernel invocation.
        # (Production note: at this size the cost is pure dispatch overhead —
        #  prefer letting XLA fuse the GEMV; kept here to exercise the kernel.)
        return pl.pallas_call(
            _linear_rowmajor_kernel,
            out_shape=jax.ShapeDtypeStruct((B, OUT), x.dtype),
            in_specs=[
                pl.BlockSpec(memory_space=pltpu.MemorySpace.VMEM),
                pl.BlockSpec(memory_space=pltpu.MemorySpace.VMEM),
                pl.BlockSpec(memory_space=pltpu.MemorySpace.VMEM),
            ],
            out_specs=pl.BlockSpec(memory_space=pltpu.MemorySpace.VMEM),
            cost_estimate=cost,
        )(x, w_t, b2d)

    # Batch-tiled path for large B: tile rows of x / y, keep W^T and b
    # resident in VMEM (index_map -> (0, 0)).  Batch axis is "parallel" so it
    # can be sharded across TensorCores (v7x megacore).
    # Tile is rounded to a multiple of 8 (sublane rule) and capped at 16384:
    # a (tb, 12) f32 block pads to 128 lanes -> tb*512 B per buffer; with
    # double-buffered input + output that's ~2 KiB * tb, which must leave
    # headroom inside v7x's 64 MiB physical VMEM.
    tb = max(8, (min(int(batch_tile), 16384) // 8) * 8)
    vmem_needed = 4 * tb * 512 + (1 << 20)                 # x/y double-buffers + slack
    vmem_limit = int(min(max(vmem_needed, 32 << 20), 48 << 20))

    return pl.pallas_call(
        _linear_rowmajor_kernel,
        out_shape=jax.ShapeDtypeStruct((B, OUT), x.dtype),
        grid=(pl.cdiv(B, tb),),
        in_specs=[
            pl.BlockSpec((tb, IN), lambda i: (i, 0)),
            pl.BlockSpec((IN, OUT), lambda i: (0, 0)),
            pl.BlockSpec((1, OUT), lambda i: (0, 0)),
        ],
        out_specs=pl.BlockSpec((tb, OUT), lambda i: (i, 0)),
        compiler_params=pltpu.CompilerParams(
            dimension_semantics=("parallel",),
            vmem_limit_bytes=vmem_limit,
        ),
        cost_estimate=cost,
    )(x, w_t, b2d)


def net_forward_lane_dense(xt, w, b, *, batch_tile=65536):
    """Lane-dense path (preferred when the producer/consumer can supply x^T /
    consume y^T for free).  xt: [12, B] f32 -> y^T: [3, B] f32.
    Batch sits on the 128-lane axis, so every vreg/VMEM tile is fully used
    (no 12/128 or 3/128 padding) and stores are unmasked full-width vst."""
    IN, B = xt.shape
    OUT, IN_w = w.shape
    assert IN == IN_w, "weight in_features mismatch"

    b2d = b.reshape(OUT, 1)
    cost = _cost(B, IN, OUT)

    if B <= batch_tile:
        return pl.pallas_call(
            _linear_lanedense_kernel,
            out_shape=jax.ShapeDtypeStruct((OUT, B), xt.dtype),
            in_specs=[
                pl.BlockSpec(memory_space=pltpu.MemorySpace.VMEM),
                pl.BlockSpec(memory_space=pltpu.MemorySpace.VMEM),
                pl.BlockSpec(memory_space=pltpu.MemorySpace.VMEM),
            ],
            out_specs=pl.BlockSpec(memory_space=pltpu.MemorySpace.VMEM),
            cost_estimate=cost,
        )(xt, w, b2d)

    # Lane axis tile must be a multiple of 128; VMEM cost is ~tb*96 B/step
    # (x^T 16x tb + y^T 8x tb f32), so much larger tiles fit than row-major.
    tb = max(128, (min(int(batch_tile), B) // 128) * 128)
    return pl.pallas_call(
        _linear_lanedense_kernel,
        out_shape=jax.ShapeDtypeStruct((OUT, B), xt.dtype),
        grid=(pl.cdiv(B, tb),),
        in_specs=[
            pl.BlockSpec((IN, tb), lambda i: (0, i)),
            pl.BlockSpec((OUT, IN), lambda i: (0, 0)),
            pl.BlockSpec((OUT, 1), lambda i: (0, 0)),
        ],
        out_specs=pl.BlockSpec((OUT, tb), lambda i: (0, i)),
        compiler_params=pltpu.CompilerParams(
            dimension_semantics=("parallel",),
        ),
        cost_estimate=cost,
    )(xt, w, b2d)


# --------------------------------- demo ------------------------------------ #

if __name__ == "__main__":
    key = jax.random.PRNGKey(0)
    k_x, k_w, k_b, k_x2, k_x3 = jax.random.split(key, 5)

    B, IN, OUT = 8, IN_FEATURES, OUT_FEATURES

    # Deterministic parameter init mimicking nn.Linear default:
    # U(-1/sqrt(in_features), 1/sqrt(in_features))
    bound = 1.0 / (IN ** 0.5)
    w = jax.random.uniform(k_w, (OUT, IN), jnp.float32, minval=-bound, maxval=bound)
    b = jax.random.uniform(k_b, (OUT,), jnp.float32, minval=-bound, maxval=bound)

    # --- main small-shape demo (single-tile VMEM path) ---
    x = jax.random.normal(k_x, (B, IN), jnp.float32)
    y = net_forward(x, w, b)
    jax.block_until_ready(y)
    y_ref = x @ w.T + b          # no ReLU: it is never applied in Net.forward
    assert y.shape == (B, OUT)
    assert jnp.allclose(y, y_ref, atol=1e-5, rtol=1e-5)

    # --- exercise the batch-tiled (grid) path with a small forced tile ---
    B2 = 1024
    x2 = jax.random.normal(k_x2, (B2, IN), jnp.float32)
    y2 = net_forward(x2, w, b, batch_tile=256)      # grid of 4 steps
    jax.block_until_ready(y2)
    assert jnp.allclose(y2, x2 @ w.T + b, atol=1e-5, rtol=1e-5)

    # --- exercise the lane-dense (batch-in-lanes) path ---
    B3 = 512
    x3 = jax.random.normal(k_x3, (B3, IN), jnp.float32)
    y3t = net_forward_lane_dense(jnp.transpose(x3), w, b, batch_tile=256)  # grid of 2
    jax.block_until_ready(y3t)
    assert y3t.shape == (OUT, B3)
    assert jnp.allclose(jnp.transpose(y3t), x3 @ w.T + b, atol=1e-5, rtol=1e-5)

    print("KERNEL_OK")
</pallas_src>

<mosaic_0001>
module attributes {stable_mosaic.version = 11 : i64} {
  func.func @_linear_rowmajor_kernel(%arg0: memref<8x12xf32, #tpu.memory_space<vmem>>, %arg1: memref<12x3xf32, #tpu.memory_space<vmem>>, %arg2: memref<1x3xf32, #tpu.memory_space<vmem>>, %arg3: memref<8x3xf32, #tpu.memory_space<vmem>>) attributes {dimension_semantics = [], scalar_prefetch = 0 : i64, scratch_operands = 0 : i64, tpu.core_type = #tpu.core_type<tc>} {
    %c0 = arith.constant 0 : index
    %c0_0 = arith.constant 0 : index
    %0 = vector.load %arg0[%c0, %c0_0] : memref<8x12xf32, #tpu.memory_space<vmem>>, vector<8x12xf32>
    %c0_1 = arith.constant 0 : index
    %c0_2 = arith.constant 0 : index
    %1 = vector.load %arg1[%c0_1, %c0_2] : memref<12x3xf32, #tpu.memory_space<vmem>>, vector<12x3xf32>
    %cst = arith.constant dense<0.000000e+00> : vector<8x3xf32>
    %2 = tpu.matmul %0, %1, %cst {dimension_numbers = #tpu.dot_dimension_numbers<[1], [0], [0], [1], [0, 0, 1, 1], [], []>} : vector<8x12xf32>, vector<12x3xf32>, vector<8x3xf32> -> vector<8x3xf32>
    %c0_3 = arith.constant 0 : index
    %c0_4 = arith.constant 0 : index
    %3 = vector.load %arg2[%c0_3, %c0_4] : memref<1x3xf32, #tpu.memory_space<vmem>>, vector<1x3xf32>
    %4 = vector.broadcast %3 : vector<1x3xf32> to vector<8x3xf32>
    %5 = arith.addf %2, %4 : vector<8x3xf32>
    %c0_5 = arith.constant 0 : index
    %c0_6 = arith.constant 0 : index
    %6 = vector.load %arg3[%c0_5, %c0_6] : memref<8x3xf32, #tpu.memory_space<vmem>>, vector<8x3xf32>
    tpu.vector_store %arg3[%c0_5, %c0_6], %5 {strides = array<i32>} : memref<8x3xf32, #tpu.memory_space<vmem>>, vector<8x3xf32>,
    return
  }
}

</mosaic_0001>

<bundles_post_ra>
// kernel: tpu_custom_call.1
= control target key start
LH: loop header
LB: loop body
LE: loop exit
PB: predicated region body
PF: predicated region fallthrough
CT: control target
= control target key end

     0   :  { %vm28_vm0 = vcmask 1043456   ;;  %v129_v0 = vmov 0.0|0.0   ;;  %vm130_vm1 = vmmov 1   ;;  %vm131_vm3 = vmmov 0   ;;  %s168_s1 = inlined_call_operand.vmem [shape: f32[12,3], index: 1, kind: input, shape index: {}]   ;;  %s169_s0 = inlined_call_operand.vmem [shape: f32[8,12], index: 0, kind: input, shape index: {}]   ;;  %s170_s2 = inlined_call_operand.vmem [shape: f32[1,3], index: 2, kind: input, shape index: {}]   ;;  %s171_s3 = inlined_call_operand.vmem [shape: f32[8,3], index: 3, kind: output, shape index: {}]  }
   0x1   :  { %121 = vmatprep.subr.bf16.mxu0 %v129_v0  ;;  %v15_v1 = vld [vmem:[%s168_s1] sm:$0xff]  ;;  %v16_v2 = vld [vmem:[%s168_s1 + $0x8] sm:$0xf]  ;;  %vm123_vm2 = vmpackc.low %vm28_vm0, %vm130_vm1  ;;  %v132_v4 = vmov 0.0   ;;  %vm24_vm4 = vcmask 97280   ;;  %vm102_vm5 = vcmask 23552  }
   0x2   :  { %v122_v3 = vpack.c.bf16 %v16_v2, %v15_v1  ;;  %118 = vmatprep.mubr.msk.f32.mxu0 %vm131_vm3, %v132_v4  ;;  %v14_v5 = vld [vmem:[%s169_s0] sm:$0xff] }
   0x3   :  { %v108_v6 = vld [vmem:[%s170_s2] ss:$0 sm:$0xff] }
   0x4   :  { %124 = vmatpush3.bf16.msk.msra.mxu0 %vm123_vm2, %v122_v3 }
   0x7   :  { %119 = vmatmul.mubr.msk.f32.vlgmr.msra.gmra.mrb[0].mxu0 %vm24_vm4, %v14_v5 }
  0xda   :  { %v98_v7 = vpop.f32.mrb[0].mxu0 }
  0xdb   :  { %v99_v8 = vadd.f32 %v108_v6, %v98_v7  ;;  %v120_v9 = vpop.f32.mrb[1].mxu0 }
  0xdd   :  { %103 = vst.msk [vmem:[%s171_s3] sm:$0xff] %vm102_vm5, %v99_v8 }

</bundles_post_ra>
